<compile_context>
chip_gen: v7x
topology: tpu7x:2x2x1
jax: 0.10.0
libtpu: 0.0.40
codegen_flags: <defaults>
</compile_context>

<pallas_src>
import functools

import jax
import jax.numpy as jnp
from jax.experimental import pallas as pl
from jax.experimental.pallas import tpu as pltpu

LANE = 128
SUBLANE = 8


def _cdiv(a, b):
    return (a + b - 1) // b


def _round_up(a, m):
    return _cdiv(a, m) * m


def ff_kernel(x_ref, w1_ref, b1_ref, w2_ref, w3_ref, o_ref):
    # Cast activations to bf16 in-kernel (VPU slot has slack); accumulate f32.
    x = x_ref[...].astype(jnp.bfloat16)
    # fc1 + bias + ReLU.  b1_ref also plants a 1.0 in the first padded lane of
    # h1 (lane H1); it survives the ReLU and feeds the folded b2/b3 below.
    h1 = jnp.dot(x, w1_ref[...], preferred_element_type=jnp.float32)
    h1 = jnp.maximum(h1 + b1_ref[...], 0.0)
    # fc2 + ReLU.  b2 is folded into row H1 of w2_ref (multiplied by the ones
    # lane) and w2_ref[H1, H2] == 1 re-plants the ones lane for the next layer.
    h2 = jnp.dot(h1.astype(jnp.bfloat16), w2_ref[...],
                 preferred_element_type=jnp.float32)
    h2 = jnp.maximum(h2, 0.0)
    # fc3 (no activation).  b3 is folded into row H2 of w3_ref; w3_ref's last
    # dim is the true n_classes, so the dot directly yields the unpadded tile.
    h3 = jnp.dot(h2.astype(jnp.bfloat16), w3_ref[...],
                 preferred_element_type=jnp.float32)
    o_ref[...] = h3.astype(o_ref.dtype)


def _choose_batch_tile(batch, tile_b):
    """Batch tile: large (amortize ~0.35us/step, fill MXU rows), layout-legal,
    and >=2 grid steps when the batch is big enough to split (v7x megacore)."""
    tile_b = max(SUBLANE, _round_up(tile_b, SUBLANE))
    if batch > tile_b:
        return tile_b                                  # cdiv grid, >=2 steps
    if batch >= 64:
        return _round_up(_cdiv(batch, 2), SUBLANE)     # 2 steps for megacore
    return batch                                       # single full-dim block


@functools.partial(jax.jit, static_argnames=("tile_b", "single_buffer_weights"))
def two_layer_ff(x, w1, b1, w2, b2, w3, b3, *, tile_b=512,
                 single_buffer_weights=True):
    """relu(x@w1+b1) -> relu(.@w2+b2) -> .@w3+b3   (weights are (in, out))."""
    B, D = x.shape
    H1 = w1.shape[1]
    H2 = w2.shape[1]
    N = w3.shape[1]

    # Hidden dims padded to 128 lanes plus one spare "ones lane" that carries
    # the folded b2/b3 biases.  x and the output stay completely unpadded.
    H1_p = _round_up(H1 + 1, LANE)
    H2_p = _round_up(H2 + 1, LANE)

    f32, bf16 = jnp.float32, jnp.bfloat16

    # w1: (D, H1_p) -- only output columns padded (x keeps its true D).
    w1_p = jnp.zeros((D, H1_p), f32).at[:, :H1].set(w1).astype(bf16)
    # b1 plus a 1.0 in lane H1 -> h1[:, H1] == 1 after the ReLU.
    b1_p = jnp.zeros((1, H1_p), f32).at[0, :H1].set(b1.reshape(-1))
    b1_p = b1_p.at[0, H1].set(1.0)
    # w2 with b2 folded into row H1 and a 1.0 at (H1, H2) so h2[:, H2] == 1.
    w2_p = jnp.zeros((H1_p, H2_p), f32).at[:H1, :H2].set(w2)
    w2_p = w2_p.at[H1, :H2].set(b2.reshape(-1)).at[H1, H2].set(1.0).astype(bf16)
    # w3 with b3 folded into row H2; last dim stays the true n_classes.
    w3_p = jnp.zeros((H2_p, N), f32).at[:H2, :N].set(w3)
    w3_p = w3_p.at[H2, :N].set(b3.reshape(-1)).astype(bf16)

    tb = _choose_batch_tile(B, tile_b)
    grid_b = _cdiv(B, tb)

    resident = lambda i: (0, 0)
    if single_buffer_weights:
        # Constant index_map -> never refetched; one buffer instead of two.
        res_spec = lambda shape: pl.BlockSpec(shape, resident,
                                              pipeline_mode=pl.Buffered(1))
    else:
        res_spec = lambda shape: pl.BlockSpec(shape, resident)

    cost = pl.CostEstimate(
        flops=2 * B * (D * H1 + H1 * H2 + H2 * N),
        transcendentals=0,
        bytes_accessed=(B * D * 4 + B * N * 4               # f32 x in, f32 out
                        + (w1_p.size + w2_p.size + w3_p.size) * 2  # bf16 W
                        + b1_p.size * 4),                   # f32 bias row
    )

    return pl.pallas_call(
        ff_kernel,
        out_shape=jax.ShapeDtypeStruct((B, N), jnp.float32),
        grid_spec=pltpu.PrefetchScalarGridSpec(
            num_scalar_prefetch=0,
            grid=(grid_b,),
            in_specs=[
                pl.BlockSpec((tb, D), lambda i: (i, 0)),  # x tile (pipelined)
                res_spec((D, H1_p)),                       # w1        (resident)
                res_spec((1, H1_p)),                       # b1 + ones lane
                res_spec((H1_p, H2_p)),                    # w2 (+b2 folded)
                res_spec((H2_p, N)),                       # w3 (+b3 folded)
            ],
            out_specs=pl.BlockSpec((tb, N), lambda i: (i, 0)),
        ),
        compiler_params=pltpu.CompilerParams(
            dimension_semantics=("parallel",),
            vmem_limit_bytes=32 * 1024 * 1024,
        ),
        cost_estimate=cost,
    )(x, w1_p, b1_p, w2_p, w3_p)


def _init_params(key, input_dim, n_classes):
    # Deterministic init mimicking nn.Linear's U(-1/sqrt(fan_in), 1/sqrt(fan_in)).
    dims = [(input_dim, 50), (50, 20), (20, n_classes)]
    params = []
    for i, (fan_in, fan_out) in enumerate(dims):
        kw, kb = jax.random.split(jax.random.fold_in(key, i))
        bound = 1.0 / jnp.sqrt(jnp.float32(fan_in))
        w = jax.random.uniform(kw, (fan_in, fan_out), jnp.float32, -bound, bound)
        b = jax.random.uniform(kb, (1, fan_out), jnp.float32, -bound, bound)
        params += [w, b]
    return params


def _reference_f32(x, w1, b1, w2, b2, w3, b3):
    h1 = jnp.maximum(x @ w1 + b1, 0.0)
    h2 = jnp.maximum(h1 @ w2 + b2, 0.0)
    return h2 @ w3 + b3


if __name__ == "__main__":
    key = jax.random.PRNGKey(0)
    batch, input_dim, n_classes = 8, 32, 10

    kx, kp = jax.random.split(key)
    x = jax.random.normal(kx, (batch, input_dim), jnp.float32)
    params = _init_params(kp, input_dim, n_classes)

    try:
        out = jax.block_until_ready(two_layer_ff(x, *params))
    except Exception:
        # pl.Buffered(1) (single-buffered resident weights) is a newer Pallas
        # feature; if this JAX build rejects it, fall back to default
        # double-buffering -- everything else is unchanged.
        out = jax.block_until_ready(
            two_layer_ff(x, *params, single_buffer_weights=False))

    ref = _reference_f32(x, *params)
    assert out.shape == (batch, n_classes)
    # bf16 MXU inputs / bf16 folded biases (f32 accumulation) -> loose tolerance.
    assert jnp.allclose(out, ref, atol=5e-2, rtol=5e-2), (
        float(jnp.max(jnp.abs(out - ref))))

    print("KERNEL_OK")
</pallas_src>

<mosaic_0001>
module attributes {stable_mosaic.version = 11 : i64} {
  func.func @ff_kernel(%arg0: i32, %arg1: memref<8x32xf32, #tpu.memory_space<vmem>>, %arg2: memref<32x128xbf16, #tpu.memory_space<vmem>>, %arg3: memref<1x128xf32, #tpu.memory_space<vmem>>, %arg4: memref<128x128xbf16, #tpu.memory_space<vmem>>, %arg5: memref<128x10xbf16, #tpu.memory_space<vmem>>, %arg6: memref<8x10xf32, #tpu.memory_space<vmem>>) attributes {dimension_semantics = [#tpu.dimension_semantics<parallel>], iteration_bounds = array<i64: 1>, scalar_prefetch = 0 : i64, scratch_operands = 0 : i64, tpu.core_type = #tpu.core_type<tc>, window_params = [{transform_indices = @transform_0, window_bounds = array<i64: 8, 32>}, {pipeline_mode = #tpu.pipeline_mode<synchronous>, transform_indices = @transform_1, window_bounds = array<i64: 32, 128>}, {pipeline_mode = #tpu.pipeline_mode<synchronous>, transform_indices = @transform_2, window_bounds = array<i64: 1, 128>}, {pipeline_mode = #tpu.pipeline_mode<synchronous>, transform_indices = @transform_3, window_bounds = array<i64: 128, 128>}, {pipeline_mode = #tpu.pipeline_mode<synchronous>, transform_indices = @transform_4, window_bounds = array<i64: 128, 10>}, {transform_indices = @transform_5, window_bounds = array<i64: 8, 10>}]} {
    %c0 = arith.constant 0 : index
    %c0_0 = arith.constant 0 : index
    %0 = vector.load %arg1[%c0, %c0_0] : memref<8x32xf32, #tpu.memory_space<vmem>>, vector<8x32xf32>
    %1 = arith.truncf %0 : vector<8x32xf32> to vector<8x32xbf16>
    %c0_1 = arith.constant 0 : index
    %c0_2 = arith.constant 0 : index
    %2 = vector.load %arg2[%c0_1, %c0_2] : memref<32x128xbf16, #tpu.memory_space<vmem>>, vector<32x128xbf16>
    %cst = arith.constant dense<0.000000e+00> : vector<8x128xf32>
    %3 = tpu.matmul %1, %2, %cst {dimension_numbers = #tpu.dot_dimension_numbers<[1], [0], [0], [1], [0, 0, 1, 1], [], []>} : vector<8x32xbf16>, vector<32x128xbf16>, vector<8x128xf32> -> vector<8x128xf32>
    %c0_3 = arith.constant 0 : index
    %c0_4 = arith.constant 0 : index
    %4 = vector.load %arg3[%c0_3, %c0_4] : memref<1x128xf32, #tpu.memory_space<vmem>>, vector<1x128xf32>
    %5 = vector.broadcast %4 : vector<1x128xf32> to vector<8x128xf32>
    %6 = arith.addf %3, %5 : vector<8x128xf32>
    %cst_5 = arith.constant 0.000000e+00 : f32
    %7 = vector.broadcast %cst_5 : f32 to vector<8x128xf32>
    %8 = arith.maximumf %6, %7 : vector<8x128xf32>
    %9 = arith.truncf %8 : vector<8x128xf32> to vector<8x128xbf16>
    %c0_6 = arith.constant 0 : index
    %c0_7 = arith.constant 0 : index
    %10 = vector.load %arg4[%c0_6, %c0_7] : memref<128x128xbf16, #tpu.memory_space<vmem>>, vector<128x128xbf16>
    %cst_8 = arith.constant dense<0.000000e+00> : vector<8x128xf32>
    %11 = tpu.matmul %9, %10, %cst_8 {dimension_numbers = #tpu.dot_dimension_numbers<[1], [0], [0], [1], [0, 0, 1, 1], [], []>} : vector<8x128xbf16>, vector<128x128xbf16>, vector<8x128xf32> -> vector<8x128xf32>
    %cst_9 = arith.constant 0.000000e+00 : f32
    %12 = vector.broadcast %cst_9 : f32 to vector<8x128xf32>
    %13 = arith.maximumf %11, %12 : vector<8x128xf32>
    %14 = arith.truncf %13 : vector<8x128xf32> to vector<8x128xbf16>
    %c0_10 = arith.constant 0 : index
    %c0_11 = arith.constant 0 : index
    %15 = vector.load %arg5[%c0_10, %c0_11] : memref<128x10xbf16, #tpu.memory_space<vmem>>, vector<128x10xbf16>
    %cst_12 = arith.constant dense<0.000000e+00> : vector<8x10xf32>
    %16 = tpu.matmul %14, %15, %cst_12 {dimension_numbers = #tpu.dot_dimension_numbers<[1], [0], [0], [1], [0, 0, 1, 1], [], []>} : vector<8x128xbf16>, vector<128x10xbf16>, vector<8x10xf32> -> vector<8x10xf32>
    %c0_13 = arith.constant 0 : index
    %c0_14 = arith.constant 0 : index
    %17 = vector.load %arg6[%c0_13, %c0_14] : memref<8x10xf32, #tpu.memory_space<vmem>>, vector<8x10xf32>
    tpu.vector_store %arg6[%c0_13, %c0_14], %16 {strides = array<i32>} : memref<8x10xf32, #tpu.memory_space<vmem>>, vector<8x10xf32>,
    return
  }
  func.func @transform_0(%arg0: i32) -> (i32, i32) {
    %c0_i32 = arith.constant 0 : i32
    %c0_i32_0 = arith.constant 0 : i32
    return %arg0, %c0_i32 : i32, i32
  }
  func.func @transform_1(%arg0: i32) -> (i32, i32) {
    %c0_i32 = arith.constant 0 : i32
    %c0_i32_0 = arith.constant 0 : i32
    %c0_i32_1 = arith.constant 0 : i32
    return %c0_i32, %c0_i32_0 : i32, i32
  }
  func.func @transform_2(%arg0: i32) -> (i32, i32) {
    %c0_i32 = arith.constant 0 : i32
    %c0_i32_0 = arith.constant 0 : i32
    %c0_i32_1 = arith.constant 0 : i32
    return %c0_i32, %c0_i32_0 : i32, i32
  }
  func.func @transform_3(%arg0: i32) -> (i32, i32) {
    %c0_i32 = arith.constant 0 : i32
    %c0_i32_0 = arith.constant 0 : i32
    %c0_i32_1 = arith.constant 0 : i32
    return %c0_i32, %c0_i32_0 : i32, i32
  }
  func.func @transform_4(%arg0: i32) -> (i32, i32) {
    %c0_i32 = arith.constant 0 : i32
    %c0_i32_0 = arith.constant 0 : i32
    %c0_i32_1 = arith.constant 0 : i32
    return %c0_i32, %c0_i32_0 : i32, i32
  }
  func.func @transform_5(%arg0: i32) -> (i32, i32) {
    %c0_i32 = arith.constant 0 : i32
    %c0_i32_0 = arith.constant 0 : i32
    return %arg0, %c0_i32 : i32, i32
  }
}

module attributes {stable_mosaic.version = 11 : i64} {
  func.func @ff_kernel(%arg0: i32, %arg1: memref<8x32xf32, #tpu.memory_space<vmem>>, %arg2: memref<32x128xbf16, #tpu.memory_space<vmem>>, %arg3: memref<1x128xf32, #tpu.memory_space<vmem>>, %arg4: memref<128x128xbf16, #tpu.memory_space<vmem>>, %arg5: memref<128x10xbf16, #tpu.memory_space<vmem>>, %arg6: memref<8x10xf32, #tpu.memory_space<vmem>>) attributes {dimension_semantics = [#tpu.dimension_semantics<parallel>], iteration_bounds = array<i64: 1>, scalar_prefetch = 0 : i64, scratch_operands = 0 : i64, tpu.core_type = #tpu.core_type<tc>, window_params = [{transform_indices = @transform_0, window_bounds = array<i64: 8, 32>}, {pipeline_mode = #tpu.pipeline_mode<synchronous>, transform_indices = @transform_1, window_bounds = array<i64: 32, 128>}, {pipeline_mode = #tpu.pipeline_mode<synchronous>, transform_indices = @transform_2, window_bounds = array<i64: 1, 128>}, {pipeline_mode = #tpu.pipeline_mode<synchronous>, transform_indices = @transform_3, window_bounds = array<i64: 128, 128>}, {pipeline_mode = #tpu.pipeline_mode<synchronous>, transform_indices = @transform_4, window_bounds = array<i64: 128, 10>}, {transform_indices = @transform_5, window_bounds = array<i64: 8, 10>}]} {
    %c0 = arith.constant 0 : index
    %c0_0 = arith.constant 0 : index
    %0 = vector.load %arg1[%c0, %c0_0] : memref<8x32xf32, #tpu.memory_space<vmem>>, vector<8x32xf32>
    %1 = arith.truncf %0 : vector<8x32xf32> to vector<8x32xbf16>
    %c0_1 = arith.constant 0 : index
    %c0_2 = arith.constant 0 : index
    %2 = vector.load %arg2[%c0_1, %c0_2] : memref<32x128xbf16, #tpu.memory_space<vmem>>, vector<32x128xbf16>
    %cst = arith.constant dense<0.000000e+00> : vector<8x128xf32>
    %3 = tpu.matmul %1, %2, %cst {dimension_numbers = #tpu.dot_dimension_numbers<[1], [0], [0], [1], [0, 0, 1, 1], [], []>} : vector<8x32xbf16>, vector<32x128xbf16>, vector<8x128xf32> -> vector<8x128xf32>
    %c0_3 = arith.constant 0 : index
    %c0_4 = arith.constant 0 : index
    %4 = vector.load %arg3[%c0_3, %c0_4] : memref<1x128xf32, #tpu.memory_space<vmem>>, vector<1x128xf32>
    %5 = vector.broadcast %4 : vector<1x128xf32> to vector<8x128xf32>
    %6 = arith.addf %3, %5 : vector<8x128xf32>
    %cst_5 = arith.constant 0.000000e+00 : f32
    %7 = vector.broadcast %cst_5 : f32 to vector<8x128xf32>
    %8 = arith.maximumf %6, %7 : vector<8x128xf32>
    %9 = arith.truncf %8 : vector<8x128xf32> to vector<8x128xbf16>
    %c0_6 = arith.constant 0 : index
    %c0_7 = arith.constant 0 : index
    %10 = vector.load %arg4[%c0_6, %c0_7] : memref<128x128xbf16, #tpu.memory_space<vmem>>, vector<128x128xbf16>
    %cst_8 = arith.constant dense<0.000000e+00> : vector<8x128xf32>
    %11 = tpu.matmul %9, %10, %cst_8 {dimension_numbers = #tpu.dot_dimension_numbers<[1], [0], [0], [1], [0, 0, 1, 1], [], []>} : vector<8x128xbf16>, vector<128x128xbf16>, vector<8x128xf32> -> vector<8x128xf32>
    %cst_9 = arith.constant 0.000000e+00 : f32
    %12 = vector.broadcast %cst_9 : f32 to vector<8x128xf32>
    %13 = arith.maximumf %11, %12 : vector<8x128xf32>
    %14 = arith.truncf %13 : vector<8x128xf32> to vector<8x128xbf16>
    %c0_10 = arith.constant 0 : index
    %c0_11 = arith.constant 0 : index
    %15 = vector.load %arg5[%c0_10, %c0_11] : memref<128x10xbf16, #tpu.memory_space<vmem>>, vector<128x10xbf16>
    %cst_12 = arith.constant dense<0.000000e+00> : vector<8x10xf32>
    %16 = tpu.matmul %14, %15, %cst_12 {dimension_numbers = #tpu.dot_dimension_numbers<[1], [0], [0], [1], [0, 0, 1, 1], [], []>} : vector<8x128xbf16>, vector<128x10xbf16>, vector<8x10xf32> -> vector<8x10xf32>
    %c0_13 = arith.constant 0 : index
    %c0_14 = arith.constant 0 : index
    %17 = vector.load %arg6[%c0_13, %c0_14] : memref<8x10xf32, #tpu.memory_space<vmem>>, vector<8x10xf32>
    tpu.vector_store %arg6[%c0_13, %c0_14], %16 {strides = array<i32>} : memref<8x10xf32, #tpu.memory_space<vmem>>, vector<8x10xf32>,
    return
  }
  func.func @transform_0(%arg0: i32) -> (i32, i32) {
    %c0_i32 = arith.constant 0 : i32
    %c0_i32_0 = arith.constant 0 : i32
    return %arg0, %c0_i32 : i32, i32
  }
  func.func @transform_1(%arg0: i32) -> (i32, i32) {
    %c0_i32 = arith.constant 0 : i32
    %c0_i32_0 = arith.constant 0 : i32
    %c0_i32_1 = arith.constant 0 : i32
    return %c0_i32, %c0_i32_0 : i32, i32
  }
  func.func @transform_2(%arg0: i32) -> (i32, i32) {
    %c0_i32 = arith.constant 0 : i32
    %c0_i32_0 = arith.constant 0 : i32
    %c0_i32_1 = arith.constant 0 : i32
    return %c0_i32, %c0_i32_0 : i32, i32
  }
  func.func @transform_3(%arg0: i32) -> (i32, i32) {
    %c0_i32 = arith.constant 0 : i32
    %c0_i32_0 = arith.constant 0 : i32
    %c0_i32_1 = arith.constant 0 : i32
    return %c0_i32, %c0_i32_0 : i32, i32
  }
  func.func @transform_4(%arg0: i32) -> (i32, i32) {
    %c0_i32 = arith.constant 0 : i32
    %c0_i32_0 = arith.constant 0 : i32
    %c0_i32_1 = arith.constant 0 : i32
    return %c0_i32, %c0_i32_0 : i32, i32
  }
  func.func @transform_5(%arg0: i32) -> (i32, i32) {
    %c0_i32 = arith.constant 0 : i32
    %c0_i32_0 = arith.constant 0 : i32
    return %arg0, %c0_i32 : i32, i32
  }
}

</mosaic_0001>

<bundles_post_ra>
// kernel: two_layer_ff.1
= control target key start
LH: loop header
LB: loop body
LE: loop exit
PB: predicated region body
PF: predicated region fallthrough
CT: control target
= control target key end

     0   :  { %v453_v1 = vmov 0.0   ;;  %vm454_vm0 = vmmov 0   ;;  %vm47_vm1 = vcmask 261120   ;;  %s561_s0 = inlined_call_operand.vmem [shape: f32[8,32], index: 0, kind: input, shape index: {}]   ;;  %s562_s1 = inlined_call_operand.vmem [shape: bf16[32,128], index: 1, kind: input, shape index: {}]   ;;  %s563_s2 = inlined_call_operand.vmem [shape: f32[1,128], index: 2, kind: input, shape index: {}]   ;;  %s564_s3 = inlined_call_operand.vmem [shape: bf16[128,128], index: 3, kind: input, shape index: {}]   ;;  %s565_s4 = inlined_call_operand.vmem [shape: bf16[128,10], index: 4, kind: input, shape index: {}]   ;;  %s566_s5 = inlined_call_operand.hbm [shape: f32[8,10], index: 5, kind: output, shape index: {}]  }
   0x1   :  { %v411_v0 = vld [vmem:[%s562_s1] sm:$0xff]   ;;  %360 = vmatprep.subr.bf16.mxu0 %v453_v1  ;;  %v412_v2 = vld [vmem:[%s562_s1 + $0x8] sm:$0xff]   ;;  %368 = vmatprep.subr.bf16.mxu1 %v453_v1  ;;  %v415_v7 = vld [vmem:[%s564_s3 + $0x10] sm:$0xff]  }
   0x2   :  { %361 = vmatpush3.bf16.msra.mxu0 %v411_v0  ;;  %364 = vmatprep.mubr.msk.bf16.mxu0 %vm454_vm0, %v453_v1  ;;  %v22_v3 = vld [vmem:[%s561_s0] sm:$0xff]  ;;  %v414_v6 = vld [vmem:[%s564_s3 + $0x8] sm:$0xff]   ;;  %v416_v8 = vld [vmem:[%s564_s3 + $0x18] sm:$0xff]  }
   0x3   :  { %362 = vmatprep.subr.bf16.mxu0 %v453_v1  ;;  %v413_v4 = vld [vmem:[%s564_s3] sm:$0xff]   ;;  %384 = vmatprep.mubr.msk.bf16.mxu1 %vm454_vm0, %v453_v1  ;;  %v23_v5 = vpack.c.bf16 %v22_v3, %v22_v3 }
   0x4   :  { %369 = vmatpush3.bf16.msra.mxu1 %v413_v4 }
   0x5   :  { %370 = vmatprep.subr.bf16.mxu1 %v453_v1 }
   0x6   :  { %363 = vmatpush3.bf16.msra.mxu0 %v412_v2 }
   0x7   :  { %388 = vmatprep.subr.bf16.mxu0 %v453_v1 }
   0x8   :  { %371 = vmatpush3.bf16.msra.mxu1 %v414_v6 }
   0x9   :  { %365 = vmatmul.mubr.msk.bf16.vlgmr.msra.gmra.mrb[0].mxu0 %vm47_vm1, %v23_v5  ;;  %372 = vmatprep.subr.bf16.mxu1 %v453_v1 }
   0xa   :  { %404 = vmatprep.mubr.msk.bf16.mxu0 %vm454_vm0, %v453_v1 }
   0xc   :  { %373 = vmatpush3.bf16.msra.mxu1 %v415_v7 }
   0xd   :  { %374 = vmatprep.subr.bf16.mxu1 %v453_v1 }
   0xe   :  { %10 = vsyncpa [#allocation3], 0  ;;  %v417_v9 = vld [vmem:[%s564_s3 + $0x20] sm:$0xff]   ;;  %v418_v10 = vld [vmem:[%s564_s3 + $0x28] sm:$0xff]   ;;  %vm303_vm2 = vcmask 80896  }
   0xf   :  { %v419_v11 = vld [vmem:[%s564_s3 + $0x30] sm:$0xff]   ;;  %v420_v12 = vld [vmem:[%s564_s3 + $0x38] sm:$0xff]   ;;  %v421_v13 = vld [vmem:[%s565_s4] sm:$0xff]  }
  0x10   :  { %375 = vmatpush3.bf16.msra.mxu1 %v416_v8  ;;  %389 = vmatpush3.bf16.msra.mxu0 %v421_v13  ;;  %v422_v14 = vld [vmem:[%s565_s4 + $0x8] sm:$0xff]   ;;  %v423_v15 = vld [vmem:[%s565_s4 + $0x10] sm:$0xff]   ;;  %v424_v16 = vld [vmem:[%s565_s4 + $0x18] sm:$0xff]  }
  0x11   :  { %376 = vmatprep.subr.bf16.mxu1 %v453_v1  ;;  %390 = vmatprep.subr.bf16.mxu0 %v453_v1  ;;  %v425_v17 = vld [vmem:[%s565_s4 + $0x20] sm:$0xff]   ;;  %v426_v18 = vld [vmem:[%s565_s4 + $0x28] sm:$0xff]   ;;  %v427_v19 = vld [vmem:[%s565_s4 + $0x30] sm:$0xff]  }
  0x12   :  { %v319_v20 = vld [vmem:[%s563_s2] ss:$0 sm:$0xff]  ;;  %v428_v28 = vld [vmem:[%s565_s4 + $0x38] sm:$0xff]   ;;  %s455_s2 = smov [#allocation2]  }
  0x13   :  { %s311_s0 = sshll.u32 %s455_s2, 4  ;;  %s312_s0 = int_to_ptr.vmem [resolvable:$true] %s311_s0 }
  0x14   :  { %377 = vmatpush3.bf16.msra.mxu1 %v417_v9  ;;  %391 = vmatpush3.bf16.msra.mxu0 %v422_v14  ;;  %s429_s29 = scalar_lea.vmem %s312_s0, 128  ;;  %p434_p1 = scmp.lt.s32.totalorder %s312_s0, %s312_s0 }
  0x15   :  { %378 = vmatprep.subr.bf16.mxu1 %v453_v1  ;;  %392 = vmatprep.subr.bf16.mxu0 %v453_v1  ;;  %p430_p0 = scmp.ne.s32.totalorder %s312_s0, %s429_s29  ;;  %p435_p2 = scmp.lt.s32.totalorder %s429_s29, %s429_s29 }
  0x17   :  { %p436_p3 = por %p435_p2, %p434_p1 }
  0x18   :  { %379 = vmatpush3.bf16.msra.mxu1 %v418_v10  ;;  %393 = vmatpush3.bf16.msra.mxu0 %v423_v15 }
  0x19   :  { %380 = vmatprep.subr.bf16.mxu1 %v453_v1  ;;  %394 = vmatprep.subr.bf16.mxu0 %v453_v1  ;;  %p437_p4 = pnand %p436_p3, %p430_p0 }
  0x1c   :  { %381 = vmatpush3.bf16.msra.mxu1 %v419_v11  ;;  %395 = vmatpush3.bf16.msra.mxu0 %v424_v16 }
  0x1d   :  { %382 = vmatprep.subr.bf16.mxu1 %v453_v1  ;;  %396 = vmatprep.subr.bf16.mxu0 %v453_v1 }
  0x20   :  { %383 = vmatpush3.bf16.msra.mxu1 %v420_v12  ;;  %397 = vmatpush3.bf16.msra.mxu0 %v425_v17 }
  0x21   :  { %398 = vmatprep.subr.bf16.mxu0 %v453_v1 }
  0x24   :  { %399 = vmatpush3.bf16.msra.mxu0 %v426_v18 }
  0x25   :  { %400 = vmatprep.subr.bf16.mxu0 %v453_v1 }
  0x28   :  { %401 = vmatpush3.bf16.msra.mxu0 %v427_v19 }
  0x29   :  { %402 = vmatprep.subr.bf16.mxu0 %v453_v1 }
  0x2c   :  { %403 = vmatpush3.bf16.msra.mxu0 %v428_v28 }
  0xdc   :  { %v85_v21 = vpop.f32.mrb[0].mxu0 }
  0xdd   :  { %v86_v22 = vadd.f32 %v319_v20, %v85_v21  ;;  %v366_v23 = vpop.f32.mrb[1].mxu0 }
  0xde   :  { %v88_v24 = vpop.f32.mrb[2].mxu0 }
  0xdf   :  { %v91_v25 = vmax.f32 %v86_v22, 0.0  ;;  %v367_v26 = vpop.f32.mrb[3].mxu0 }
  0xe1   :  { %v92_v27 = vpack.c.bf16 %v91_v25, %v91_v25 }
  0xe3   :  { %385 = vmatmul.mubr.bf16.vlgmr.msra.gmra.mrb[0].mxu1 %v92_v27 }
 0x1b6   :  { %v191_v29 = vpop.f32.mrb[0].mxu1 }
 0x1b7   :  { %v197_v30 = vmax.f32 %v191_v29, 0.0  ;;  %v386_v31 = vpop.f32.mrb[1].mxu1 }
 0x1b8   :  { %v194_v32 = vpop.f32.mrb[2].mxu1 }
 0x1b9   :  { %v198_v33 = vpack.c.bf16 %v197_v30, %v197_v30  ;;  %v387_v34 = vpop.f32.mrb[3].mxu1 }
 0x1bb   :  { %405 = vmatmul.mubr.bf16.vlgmr.msra.gmra.mrb[4].mxu0 %v198_v33 }
 0x28e   :  { %v297_v35 = vpop.f32.mrb[4].mxu0 }
 0x28f   :  { %304 = vst.msk [vmem:[#allocation2] sm:$0xff] %vm303_vm2, %v297_v35  ;;  %v406_v36 = vpop.f32.mrb[5].mxu0 }
 0x290   :  { %v300_v37 = vpop.f32.mrb[6].mxu0 }
 0x291   :  { %440 = shalt.err (!%p437_p4)
}
 0x292   :  { %s441_s6 = scalar_lea.hbm %s566_s5, 128 }
 0x293   :  { %p442_p5 = scmp.ne.s32.totalorder %s566_s5, %s441_s6  ;;  %p445_p6 = scmp.lt.u32.totalorder %s441_s6, %s566_s5 }
 0x295   :  { %p447_p7 = pnand %p445_p6, %p442_p5 }
 0x297   :  { %450 = shalt.err (!%p447_p7)
}
 0x298   :  { %314 = dma.vmem_to_hbm [thread:$0]  %s312_s0, 128, %s566_s5, [#allocation3]   ;;  %v407_v38 = vpop.f32.mrb[7].mxu0 }
 0x299   :  { %451 = dma.done.wait [#allocation3], 128  }
 0x29a   :  { %452 = vsyncadd [#allocation3], 4294967168 }
 0x29b   :  { %318 = vsyncpa [#allocation3], 1 }

// kernel: two_layer_ff.1
= control target key start
LH: loop header
LB: loop body
LE: loop exit
PB: predicated region body
PF: predicated region fallthrough
CT: control target
= control target key end

     0   :  { %v453_v1 = vmov 0.0   ;;  %vm454_vm0 = vmmov 0   ;;  %vm47_vm1 = vcmask 261120   ;;  %s561_s0 = inlined_call_operand.vmem [shape: f32[8,32], index: 0, kind: input, shape index: {}]   ;;  %s562_s1 = inlined_call_operand.vmem [shape: bf16[32,128], index: 1, kind: input, shape index: {}]   ;;  %s563_s2 = inlined_call_operand.vmem [shape: f32[1,128], index: 2, kind: input, shape index: {}]   ;;  %s564_s3 = inlined_call_operand.vmem [shape: bf16[128,128], index: 3, kind: input, shape index: {}]   ;;  %s565_s4 = inlined_call_operand.vmem [shape: bf16[128,10], index: 4, kind: input, shape index: {}]   ;;  %s566_s5 = inlined_call_operand.hbm [shape: f32[8,10], index: 5, kind: output, shape index: {}]  }
   0x1   :  { %v411_v0 = vld [vmem:[%s562_s1] sm:$0xff]   ;;  %360 = vmatprep.subr.bf16.mxu0 %v453_v1  ;;  %v412_v2 = vld [vmem:[%s562_s1 + $0x8] sm:$0xff]   ;;  %368 = vmatprep.subr.bf16.mxu1 %v453_v1  ;;  %v415_v7 = vld [vmem:[%s564_s3 + $0x10] sm:$0xff]  }
   0x2   :  { %361 = vmatpush3.bf16.msra.mxu0 %v411_v0  ;;  %364 = vmatprep.mubr.msk.bf16.mxu0 %vm454_vm0, %v453_v1  ;;  %v22_v3 = vld [vmem:[%s561_s0] sm:$0xff]  ;;  %v414_v6 = vld [vmem:[%s564_s3 + $0x8] sm:$0xff]   ;;  %v416_v8 = vld [vmem:[%s564_s3 + $0x18] sm:$0xff]  }
   0x3   :  { %362 = vmatprep.subr.bf16.mxu0 %v453_v1  ;;  %v413_v4 = vld [vmem:[%s564_s3] sm:$0xff]   ;;  %384 = vmatprep.mubr.msk.bf16.mxu1 %vm454_vm0, %v453_v1  ;;  %v23_v5 = vpack.c.bf16 %v22_v3, %v22_v3 }
   0x4   :  { %369 = vmatpush3.bf16.msra.mxu1 %v413_v4 }
   0x5   :  { %370 = vmatprep.subr.bf16.mxu1 %v453_v1 }
   0x6   :  { %363 = vmatpush3.bf16.msra.mxu0 %v412_v2 }
   0x7   :  { %388 = vmatprep.subr.bf16.mxu0 %v453_v1 }
   0x8   :  { %371 = vmatpush3.bf16.msra.mxu1 %v414_v6 }
   0x9   :  { %365 = vmatmul.mubr.msk.bf16.vlgmr.msra.gmra.mrb[0].mxu0 %vm47_vm1, %v23_v5  ;;  %372 = vmatprep.subr.bf16.mxu1 %v453_v1 }
   0xa   :  { %404 = vmatprep.mubr.msk.bf16.mxu0 %vm454_vm0, %v453_v1 }
   0xc   :  { %373 = vmatpush3.bf16.msra.mxu1 %v415_v7 }
   0xd   :  { %374 = vmatprep.subr.bf16.mxu1 %v453_v1 }
   0xe   :  { %10 = vsyncpa [#allocation3], 0  ;;  %v417_v9 = vld [vmem:[%s564_s3 + $0x20] sm:$0xff]   ;;  %v418_v10 = vld [vmem:[%s564_s3 + $0x28] sm:$0xff]   ;;  %vm303_vm2 = vcmask 80896  }
   0xf   :  { %v419_v11 = vld [vmem:[%s564_s3 + $0x30] sm:$0xff]   ;;  %v420_v12 = vld [vmem:[%s564_s3 + $0x38] sm:$0xff]   ;;  %v421_v13 = vld [vmem:[%s565_s4] sm:$0xff]  }
  0x10   :  { %375 = vmatpush3.bf16.msra.mxu1 %v416_v8  ;;  %389 = vmatpush3.bf16.msra.mxu0 %v421_v13  ;;  %v422_v14 = vld [vmem:[%s565_s4 + $0x8] sm:$0xff]   ;;  %v423_v15 = vld [vmem:[%s565_s4 + $0x10] sm:$0xff]   ;;  %v424_v16 = vld [vmem:[%s565_s4 + $0x18] sm:$0xff]  }
  0x11   :  { %376 = vmatprep.subr.bf16.mxu1 %v453_v1  ;;  %390 = vmatprep.subr.bf16.mxu0 %v453_v1  ;;  %v425_v17 = vld [vmem:[%s565_s4 + $0x20] sm:$0xff]   ;;  %v426_v18 = vld [vmem:[%s565_s4 + $0x28] sm:$0xff]   ;;  %v427_v19 = vld [vmem:[%s565_s4 + $0x30] sm:$0xff]  }
  0x12   :  { %v319_v20 = vld [vmem:[%s563_s2] ss:$0 sm:$0xff]  ;;  %v428_v28 = vld [vmem:[%s565_s4 + $0x38] sm:$0xff]   ;;  %s455_s2 = smov [#allocation2]  }
  0x13   :  { %s311_s0 = sshll.u32 %s455_s2, 4  ;;  %s312_s0 = int_to_ptr.vmem [resolvable:$true] %s311_s0 }
  0x14   :  { %377 = vmatpush3.bf16.msra.mxu1 %v417_v9  ;;  %391 = vmatpush3.bf16.msra.mxu0 %v422_v14  ;;  %s429_s29 = scalar_lea.vmem %s312_s0, 128  ;;  %p434_p1 = scmp.lt.s32.totalorder %s312_s0, %s312_s0 }
  0x15   :  { %378 = vmatprep.subr.bf16.mxu1 %v453_v1  ;;  %392 = vmatprep.subr.bf16.mxu0 %v453_v1  ;;  %p430_p0 = scmp.ne.s32.totalorder %s312_s0, %s429_s29  ;;  %p435_p2 = scmp.lt.s32.totalorder %s429_s29, %s429_s29 }
  0x17   :  { %p436_p3 = por %p435_p2, %p434_p1 }
  0x18   :  { %379 = vmatpush3.bf16.msra.mxu1 %v418_v10  ;;  %393 = vmatpush3.bf16.msra.mxu0 %v423_v15 }
  0x19   :  { %380 = vmatprep.subr.bf16.mxu1 %v453_v1  ;;  %394 = vmatprep.subr.bf16.mxu0 %v453_v1  ;;  %p437_p4 = pnand %p436_p3, %p430_p0 }
  0x1c   :  { %381 = vmatpush3.bf16.msra.mxu1 %v419_v11  ;;  %395 = vmatpush3.bf16.msra.mxu0 %v424_v16 }
  0x1d   :  { %382 = vmatprep.subr.bf16.mxu1 %v453_v1  ;;  %396 = vmatprep.subr.bf16.mxu0 %v453_v1 }
  0x20   :  { %383 = vmatpush3.bf16.msra.mxu1 %v420_v12  ;;  %397 = vmatpush3.bf16.msra.mxu0 %v425_v17 }
  0x21   :  { %398 = vmatprep.subr.bf16.mxu0 %v453_v1 }
  0x24   :  { %399 = vmatpush3.bf16.msra.mxu0 %v426_v18 }
  0x25   :  { %400 = vmatprep.subr.bf16.mxu0 %v453_v1 }
  0x28   :  { %401 = vmatpush3.bf16.msra.mxu0 %v427_v19 }
  0x29   :  { %402 = vmatprep.subr.bf16.mxu0 %v453_v1 }
  0x2c   :  { %403 = vmatpush3.bf16.msra.mxu0 %v428_v28 }
  0xdc   :  { %v85_v21 = vpop.f32.mrb[0].mxu0 }
  0xdd   :  { %v86_v22 = vadd.f32 %v319_v20, %v85_v21  ;;  %v366_v23 = vpop.f32.mrb[1].mxu0 }
  0xde   :  { %v88_v24 = vpop.f32.mrb[2].mxu0 }
  0xdf   :  { %v91_v25 = vmax.f32 %v86_v22, 0.0  ;;  %v367_v26 = vpop.f32.mrb[3].mxu0 }
  0xe1   :  { %v92_v27 = vpack.c.bf16 %v91_v25, %v91_v25 }
  0xe3   :  { %385 = vmatmul.mubr.bf16.vlgmr.msra.gmra.mrb[0].mxu1 %v92_v27 }
 0x1b6   :  { %v191_v29 = vpop.f32.mrb[0].mxu1 }
 0x1b7   :  { %v197_v30 = vmax.f32 %v191_v29, 0.0  ;;  %v386_v31 = vpop.f32.mrb[1].mxu1 }
 0x1b8   :  { %v194_v32 = vpop.f32.mrb[2].mxu1 }
 0x1b9   :  { %v198_v33 = vpack.c.bf16 %v197_v30, %v197_v30  ;;  %v387_v34 = vpop.f32.mrb[3].mxu1 }
 0x1bb   :  { %405 = vmatmul.mubr.bf16.vlgmr.msra.gmra.mrb[4].mxu0 %v198_v33 }
 0x28e   :  { %v297_v35 = vpop.f32.mrb[4].mxu0 }
 0x28f   :  { %304 = vst.msk [vmem:[#allocation2] sm:$0xff] %vm303_vm2, %v297_v35  ;;  %v406_v36 = vpop.f32.mrb[5].mxu0 }
 0x290   :  { %v300_v37 = vpop.f32.mrb[6].mxu0 }
 0x291   :  { %440 = shalt.err (!%p437_p4)
}
 0x292   :  { %s441_s6 = scalar_lea.hbm %s566_s5, 128 }
 0x293   :  { %p442_p5 = scmp.ne.s32.totalorder %s566_s5, %s441_s6  ;;  %p445_p6 = scmp.lt.u32.totalorder %s441_s6, %s566_s5 }
 0x295   :  { %p447_p7 = pnand %p445_p6, %p442_p5 }
 0x297   :  { %450 = shalt.err (!%p447_p7)
}
 0x298   :  { %314 = dma.vmem_to_hbm [thread:$0]  %s312_s0, 128, %s566_s5, [#allocation3]   ;;  %v407_v38 = vpop.f32.mrb[7].mxu0 }
 0x299   :  { %451 = dma.done.wait [#allocation3], 128  }
 0x29a   :  { %452 = vsyncadd [#allocation3], 4294967168 }
 0x29b   :  { %318 = vsyncpa [#allocation3], 1 }

</bundles_post_ra>
